<compile_context>
chip_gen: v7x
topology: tpu7x:2x2x1
jax: 0.10.0
libtpu: 0.0.40
codegen_flags: <defaults>
</compile_context>

<pallas_src>
import math
import jax
import jax.numpy as jnp
from jax.experimental import pallas as pl
from jax.experimental.pallas import tpu as pltpu


# ---------------------------------------------------------------------------
# Kernel
# ---------------------------------------------------------------------------
def _projection_head_kernel(x_ref, w1_ref, w2_ref, params_ref, o_ref):
    # params_ref rows: 0=b1, 1=b2, 2=gamma, 3=beta (all f32, shape [4, P])
    b1 = params_ref[0:1, :]
    b2 = params_ref[1:2, :]
    gamma = params_ref[2:3, :]
    beta = params_ref[3:4, :]

    # projection: x @ W1 + b1  (W1 stored [E, P]); native-dtype operands, f32 accumulate
    projected = jnp.dot(x_ref[...], w1_ref[...],
                        preferred_element_type=jnp.float32) + b1

    # exact GELU (erf form, torch.nn.GELU default)
    h = 0.5 * projected * (1.0 + jax.lax.erf(projected * jnp.float32(0.7071067811865475)))

    # fc: h @ W2 + b2  (W2 stored [P, P]); cast h back to weight dtype for the MXU
    y = jnp.dot(h.astype(w2_ref.dtype), w2_ref[...],
                preferred_element_type=jnp.float32) + b2

    # dropout: identity in inference/eval mode
    # TODO(synk): training-mode dropout (pltpu.prng_seed + prng_random_bits mask + 1/(1-p) scale).

    # residual with the pre-GELU projection (as in the PyTorch module)
    y = y + projected

    # LayerNorm over last dim, eps=1e-5 (PyTorch default) — centered two-pass variance
    inv_p = jnp.float32(1.0 / y.shape[-1])
    mean = jnp.sum(y, axis=-1, keepdims=True) * inv_p
    d = y - mean
    var = jnp.sum(d * d, axis=-1, keepdims=True) * inv_p
    out = d * jax.lax.rsqrt(var + jnp.float32(1e-5)) * gamma + beta

    o_ref[...] = out.astype(o_ref.dtype)


# ---------------------------------------------------------------------------
# Hardware / tiling helpers
# ---------------------------------------------------------------------------
def _dtype_sublane(dtype):
    bits = jnp.dtype(dtype).itemsize * 8
    if bits >= 32:
        return 8
    if bits == 16:
        return 16
    return 32


def _round_up(n, m):
    return ((n + m - 1) // m) * m


def _vmem_capacity_bytes():
    try:
        return int(pltpu.get_tpu_info().vmem_capacity_bytes)
    except Exception:
        return 64 * 1024 * 1024  # conservative (v7x per-TC VMEM)


def _num_tensorcores():
    try:
        info = pltpu.get_tpu_info()
        for name in ("tensorcores_per_chip", "num_tensorcores", "num_cores"):
            v = getattr(info, name, None)
            if v:
                return int(v)
    except Exception:
        pass
    try:
        return max(1, int(getattr(jax.local_devices()[0], "num_cores", 1) or 1))
    except Exception:
        return 1


def _vmem_footprint_bytes(tm, E, P, x_dtype, w_dtype, out_dtype, single_buffer_invariants):
    xb = jnp.dtype(x_dtype).itemsize
    wb = jnp.dtype(w_dtype).itemsize
    ob = jnp.dtype(out_dtype).itemsize
    wbuf = 1 if single_buffer_invariants else 2
    resident = wbuf * (E * P * wb + P * P * wb + 8 * P * 4)   # weights + padded [4,P] params
    streamed = 2 * (tm * E * xb + tm * P * ob)                # double-buffered x / out tiles
    interm = 4 * tm * P * 4                                   # projected / h / y / out f32 temps
    return resident + streamed + interm


def _pick_tile_m(B, E, P, x_dtype, w_dtype, out_dtype, *, vmem_budget, num_cores, cap=512):
    """Largest dtype-aligned batch tile that fits VMEM; split only when needed."""
    sub = max(_dtype_sublane(x_dtype), _dtype_sublane(out_dtype))

    # Whole batch in one tile unless it exceeds the cap (512 rows amortizes per-step
    # overhead and fills the 256-wide MXU on v6e/v7x).
    tm = B if B <= cap else cap

    # On multi-TensorCore chips (v7x) make sure the 'parallel' batch axis has >=2 steps
    # so both cores get work; never force the split on single-TC parts (v5e/v6e).
    if num_cores >= 2 and B > sub:
        tm = min(tm, max(sub, _round_up(pl.cdiv(B, num_cores), sub)))

    # A strict sub-block of the batch must obey the dtype sublane rule.
    if tm < B:
        tm = max(sub, (tm // sub) * sub)

    # Shrink (sublane-aligned halving) only if the VMEM footprint demands it.
    while tm > sub and _vmem_footprint_bytes(
            tm, E, P, x_dtype, w_dtype, out_dtype, True) > vmem_budget:
        tm = max(sub, ((tm // 2) // sub) * sub)

    return tm


# ---------------------------------------------------------------------------
# pallas_call builder + public wrapper
# ---------------------------------------------------------------------------
def _make_projection_call(B, E, P, out_dtype, tm, *, single_buffer_invariants,
                          vmem_limit_bytes, cost):
    grid_m = pl.cdiv(B, tm)

    if single_buffer_invariants:
        def const_spec(shape):
            return pl.BlockSpec(shape, lambda i: (0, 0), pipeline_mode=pl.Buffered(1))
    else:
        def const_spec(shape):
            return pl.BlockSpec(shape, lambda i: (0, 0))

    return pl.pallas_call(
        _projection_head_kernel,
        out_shape=jax.ShapeDtypeStruct((B, P), out_dtype),
        grid_spec=pltpu.PrefetchScalarGridSpec(
            num_scalar_prefetch=0,
            grid=(grid_m,),
            in_specs=[
                pl.BlockSpec((tm, E), lambda i: (i, 0)),   # x       (streamed per tile)
                const_spec((E, P)),                        # w1      (VMEM-resident)
                const_spec((P, P)),                        # w2      (VMEM-resident)
                const_spec((4, P)),                        # b1/b2/gamma/beta fused (f32)
            ],
            out_specs=pl.BlockSpec((tm, P), lambda i: (i, 0)),
        ),
        compiler_params=pltpu.CompilerParams(
            dimension_semantics=("parallel",),
            vmem_limit_bytes=vmem_limit_bytes,
        ),
        cost_estimate=cost,
    )


def projection_head(x, w1, b1, w2, b2, gamma, beta, *, tile_m=None):
    """x: [B, E]; w1: [E, P] (pre-transposed); b1/gamma/beta: [P]; w2: [P, P]; b2: [P]."""
    B, E = x.shape
    P = w1.shape[1]
    out_dtype = x.dtype

    vmem_cap = _vmem_capacity_bytes()
    num_cores = _num_tensorcores()
    vmem_budget = int(vmem_cap * 0.7)

    tm = tile_m if tile_m is not None else _pick_tile_m(
        B, E, P, x.dtype, w1.dtype, out_dtype,
        vmem_budget=vmem_budget, num_cores=num_cores)

    # Fuse the four [P] epilogue params into a single lane-dense [4, P] f32 operand.
    params = jnp.stack([
        b1.astype(jnp.float32),
        b2.astype(jnp.float32),
        gamma.astype(jnp.float32),
        beta.astype(jnp.float32),
    ], axis=0)

    # Right-size the scoped VMEM limit: actual footprint (double-buffered worst case)
    # plus margin, clamped below physical VMEM (v7x has only 64 MiB/TC).
    fp_db = _vmem_footprint_bytes(tm, E, P, x.dtype, w1.dtype, out_dtype, False)
    vmem_limit = int(min(vmem_cap - (8 << 20),
                         max(32 << 20, int(fp_db * 1.5) + (4 << 20))))

    cost = pl.CostEstimate(
        flops=2 * B * E * P + 2 * B * P * P,
        transcendentals=B * P,  # erf
        bytes_accessed=(B * E * jnp.dtype(x.dtype).itemsize
                        + E * P * jnp.dtype(w1.dtype).itemsize
                        + P * P * jnp.dtype(w2.dtype).itemsize
                        + 4 * P * 4
                        + B * P * jnp.dtype(out_dtype).itemsize),
    )

    last_err = None
    for single_buffer in (True, False):
        try:
            fn = _make_projection_call(B, E, P, out_dtype, tm,
                                       single_buffer_invariants=single_buffer,
                                       vmem_limit_bytes=vmem_limit,
                                       cost=cost)
            return fn(x, w1, w2, params)
        except Exception as e:  # fall back to default double-buffering if Buffered(1) rejected
            last_err = e
            if not single_buffer:
                raise
    raise last_err  # unreachable


# ---------------------------------------------------------------------------
# Params init (nn.Linear-style) + demo / reference check
# ---------------------------------------------------------------------------
def _init_params(key, embedding_dim, projection_dim, weight_dtype=jnp.bfloat16,
                 param_dtype=jnp.float32):
    """Mimics nn.Linear defaults (uniform +/- 1/sqrt(fan_in)); weights stored as [in, out]."""
    k1, k2, k3, k4, k5, k6 = jax.random.split(key, 6)
    bound1 = 1.0 / math.sqrt(embedding_dim)
    bound2 = 1.0 / math.sqrt(projection_dim)
    w1 = jax.random.uniform(k1, (embedding_dim, projection_dim), jnp.float32,
                            -bound1, bound1).astype(weight_dtype)
    b1 = jax.random.uniform(k2, (projection_dim,), param_dtype, -bound1, bound1)
    w2 = jax.random.uniform(k3, (projection_dim, projection_dim), jnp.float32,
                            -bound2, bound2).astype(weight_dtype)
    b2 = jax.random.uniform(k4, (projection_dim,), param_dtype, -bound2, bound2)
    gamma = (1.0 + 0.1 * jax.random.normal(k5, (projection_dim,))).astype(param_dtype)
    beta = (0.1 * jax.random.normal(k6, (projection_dim,))).astype(param_dtype)
    return w1, b1, w2, b2, gamma, beta


if __name__ == "__main__":
    # Small, lane-dense shapes: E and P multiples of 128 (unmasked stores, full MXU lanes).
    # Activations / weights in bf16 (MXU-native), epilogue params in f32.
    batch = 16
    embedding_dim = 128
    projection_dim = 128   # stand-in for opts.projection_dim (default 512)
    act_dtype = jnp.bfloat16

    key = jax.random.PRNGKey(0)
    k_x, k_p = jax.random.split(key)
    x = jax.random.normal(k_x, (batch, embedding_dim), jnp.float32).astype(act_dtype)
    w1, b1, w2, b2, gamma, beta = _init_params(k_p, embedding_dim, projection_dim,
                                               weight_dtype=act_dtype,
                                               param_dtype=jnp.float32)

    out = projection_head(x, w1, b1, w2, b2, gamma, beta)
    jax.block_until_ready(out)

    # Reference in plain JAX with the same operand dtypes (eval-mode PyTorch math).
    projected = jnp.dot(x, w1, preferred_element_type=jnp.float32) + b1
    h = 0.5 * projected * (1.0 + jax.lax.erf(projected / jnp.sqrt(2.0)))
    y = jnp.dot(h.astype(w2.dtype), w2, preferred_element_type=jnp.float32) + b2 + projected
    mean = y.mean(-1, keepdims=True)
    var = ((y - mean) ** 2).mean(-1, keepdims=True)
    ref = (y - mean) * jax.lax.rsqrt(var + 1e-5) * gamma + beta

    assert jnp.allclose(out.astype(jnp.float32), ref, atol=2e-2, rtol=2e-2), \
        "mismatch vs reference"

    print("KERNEL_OK")
</pallas_src>

<mosaic_0001>
module attributes {stable_mosaic.version = 11 : i64} {
  func.func @_projection_head_kernel(%arg0: i32, %arg1: memref<16x128xbf16, #tpu.memory_space<vmem>>, %arg2: memref<128x128xbf16, #tpu.memory_space<vmem>>, %arg3: memref<128x128xbf16, #tpu.memory_space<vmem>>, %arg4: memref<4x128xf32, #tpu.memory_space<vmem>>, %arg5: memref<16x128xbf16, #tpu.memory_space<vmem>>) attributes {dimension_semantics = [#tpu.dimension_semantics<parallel>], iteration_bounds = array<i64: 1>, scalar_prefetch = 0 : i64, scratch_operands = 0 : i64, tpu.core_type = #tpu.core_type<tc>, window_params = [{transform_indices = @transform_0, window_bounds = array<i64: 16, 128>}, {pipeline_mode = #tpu.pipeline_mode<synchronous>, transform_indices = @transform_1, window_bounds = array<i64: 128, 128>}, {pipeline_mode = #tpu.pipeline_mode<synchronous>, transform_indices = @transform_2, window_bounds = array<i64: 128, 128>}, {pipeline_mode = #tpu.pipeline_mode<synchronous>, transform_indices = @transform_3, window_bounds = array<i64: 4, 128>}, {transform_indices = @transform_4, window_bounds = array<i64: 16, 128>}]} {
    %c0 = arith.constant 0 : index
    %c0_0 = arith.constant 0 : index
    %0 = vector.load %arg4[%c0, %c0_0] : memref<4x128xf32, #tpu.memory_space<vmem>>, vector<1x128xf32>
    %c1 = arith.constant 1 : index
    %c0_1 = arith.constant 0 : index
    %1 = vector.load %arg4[%c1, %c0_1] : memref<4x128xf32, #tpu.memory_space<vmem>>, vector<1x128xf32>
    %c2 = arith.constant 2 : index
    %c0_2 = arith.constant 0 : index
    %2 = vector.load %arg4[%c2, %c0_2] : memref<4x128xf32, #tpu.memory_space<vmem>>, vector<1x128xf32>
    %c3 = arith.constant 3 : index
    %c0_3 = arith.constant 0 : index
    %3 = vector.load %arg4[%c3, %c0_3] : memref<4x128xf32, #tpu.memory_space<vmem>>, vector<1x128xf32>
    %c0_4 = arith.constant 0 : index
    %c0_5 = arith.constant 0 : index
    %4 = vector.load %arg1[%c0_4, %c0_5] : memref<16x128xbf16, #tpu.memory_space<vmem>>, vector<16x128xbf16>
    %c0_6 = arith.constant 0 : index
    %c0_7 = arith.constant 0 : index
    %5 = vector.load %arg2[%c0_6, %c0_7] : memref<128x128xbf16, #tpu.memory_space<vmem>>, vector<128x128xbf16>
    %cst = arith.constant dense<0.000000e+00> : vector<16x128xf32>
    %6 = tpu.matmul %4, %5, %cst {dimension_numbers = #tpu.dot_dimension_numbers<[1], [0], [0], [1], [0, 0, 1, 1], [], []>} : vector<16x128xbf16>, vector<128x128xbf16>, vector<16x128xf32> -> vector<16x128xf32>
    %7 = vector.broadcast %0 : vector<1x128xf32> to vector<16x128xf32>
    %8 = arith.addf %6, %7 : vector<16x128xf32>
    %cst_8 = arith.constant 5.000000e-01 : f32
    %9 = vector.broadcast %cst_8 : f32 to vector<16x128xf32>
    %10 = arith.mulf %9, %8 : vector<16x128xf32>
    %cst_9 = arith.constant 0.707106769 : f32
    %11 = vector.broadcast %cst_9 : f32 to vector<16x128xf32>
    %12 = arith.mulf %8, %11 : vector<16x128xf32>
    %13 = math.erf %12 : vector<16x128xf32>
    %cst_10 = arith.constant 1.000000e+00 : f32
    %14 = vector.broadcast %cst_10 : f32 to vector<16x128xf32>
    %15 = arith.addf %14, %13 : vector<16x128xf32>
    %16 = arith.mulf %10, %15 : vector<16x128xf32>
    %17 = arith.truncf %16 : vector<16x128xf32> to vector<16x128xbf16>
    %c0_11 = arith.constant 0 : index
    %c0_12 = arith.constant 0 : index
    %18 = vector.load %arg3[%c0_11, %c0_12] : memref<128x128xbf16, #tpu.memory_space<vmem>>, vector<128x128xbf16>
    %cst_13 = arith.constant dense<0.000000e+00> : vector<16x128xf32>
    %19 = tpu.matmul %17, %18, %cst_13 {dimension_numbers = #tpu.dot_dimension_numbers<[1], [0], [0], [1], [0, 0, 1, 1], [], []>} : vector<16x128xbf16>, vector<128x128xbf16>, vector<16x128xf32> -> vector<16x128xf32>
    %20 = vector.broadcast %1 : vector<1x128xf32> to vector<16x128xf32>
    %21 = arith.addf %19, %20 : vector<16x128xf32>
    %22 = arith.addf %21, %8 : vector<16x128xf32>
    %cst_14 = arith.constant dense<0.000000e+00> : vector<16xf32>
    %23 = vector.multi_reduction <add>, %22, %cst_14 [1] : vector<16x128xf32> to vector<16xf32>
    %24 = vector.shape_cast %23 : vector<16xf32> to vector<16x1xf32>
    %cst_15 = arith.constant 7.812500e-03 : f32
    %25 = vector.broadcast %cst_15 : f32 to vector<16x1xf32>
    %26 = arith.mulf %24, %25 : vector<16x1xf32>
    %27 = vector.broadcast %26 : vector<16x1xf32> to vector<16x128xf32>
    %28 = arith.subf %22, %27 : vector<16x128xf32>
    %29 = arith.mulf %28, %28 : vector<16x128xf32>
    %cst_16 = arith.constant dense<0.000000e+00> : vector<16xf32>
    %30 = vector.multi_reduction <add>, %29, %cst_16 [1] : vector<16x128xf32> to vector<16xf32>
    %31 = vector.shape_cast %30 : vector<16xf32> to vector<16x1xf32>
    %cst_17 = arith.constant 7.812500e-03 : f32
    %32 = vector.broadcast %cst_17 : f32 to vector<16x1xf32>
    %33 = arith.mulf %31, %32 : vector<16x1xf32>
    %cst_18 = arith.constant 9.99999974E-6 : f32
    %34 = vector.broadcast %cst_18 : f32 to vector<16x1xf32>
    %35 = arith.addf %33, %34 : vector<16x1xf32>
    %36 = math.rsqrt %35 : vector<16x1xf32>
    %37 = vector.broadcast %36 : vector<16x1xf32> to vector<16x128xf32>
    %38 = arith.mulf %28, %37 : vector<16x128xf32>
    %39 = vector.broadcast %2 : vector<1x128xf32> to vector<16x128xf32>
    %40 = arith.mulf %38, %39 : vector<16x128xf32>
    %41 = vector.broadcast %3 : vector<1x128xf32> to vector<16x128xf32>
    %42 = arith.addf %40, %41 : vector<16x128xf32>
    %43 = arith.truncf %42 : vector<16x128xf32> to vector<16x128xbf16>
    %c0_19 = arith.constant 0 : index
    %c0_20 = arith.constant 0 : index
    %44 = vector.load %arg5[%c0_19, %c0_20] : memref<16x128xbf16, #tpu.memory_space<vmem>>, vector<16x128xbf16>
    tpu.vector_store %arg5[%c0_19, %c0_20], %43 {strides = array<i32>} : memref<16x128xbf16, #tpu.memory_space<vmem>>, vector<16x128xbf16>,
    return
  }
  func.func @transform_0(%arg0: i32) -> (i32, i32) {
    %c0_i32 = arith.constant 0 : i32
    %c0_i32_0 = arith.constant 0 : i32
    return %arg0, %c0_i32 : i32, i32
  }
  func.func @transform_1(%arg0: i32) -> (i32, i32) {
    %c0_i32 = arith.constant 0 : i32
    %c0_i32_0 = arith.constant 0 : i32
    %c0_i32_1 = arith.constant 0 : i32
    return %c0_i32, %c0_i32_0 : i32, i32
  }
  func.func @transform_2(%arg0: i32) -> (i32, i32) {
    %c0_i32 = arith.constant 0 : i32
    %c0_i32_0 = arith.constant 0 : i32
    %c0_i32_1 = arith.constant 0 : i32
    return %c0_i32, %c0_i32_0 : i32, i32
  }
  func.func @transform_3(%arg0: i32) -> (i32, i32) {
    %c0_i32 = arith.constant 0 : i32
    %c0_i32_0 = arith.constant 0 : i32
    %c0_i32_1 = arith.constant 0 : i32
    return %c0_i32, %c0_i32_0 : i32, i32
  }
  func.func @transform_4(%arg0: i32) -> (i32, i32) {
    %c0_i32 = arith.constant 0 : i32
    %c0_i32_0 = arith.constant 0 : i32
    return %arg0, %c0_i32 : i32, i32
  }
}

module attributes {stable_mosaic.version = 11 : i64} {
  func.func @_projection_head_kernel(%arg0: i32, %arg1: memref<16x128xbf16, #tpu.memory_space<vmem>>, %arg2: memref<128x128xbf16, #tpu.memory_space<vmem>>, %arg3: memref<128x128xbf16, #tpu.memory_space<vmem>>, %arg4: memref<4x128xf32, #tpu.memory_space<vmem>>, %arg5: memref<16x128xbf16, #tpu.memory_space<vmem>>) attributes {dimension_semantics = [#tpu.dimension_semantics<parallel>], iteration_bounds = array<i64: 1>, scalar_prefetch = 0 : i64, scratch_operands = 0 : i64, tpu.core_type = #tpu.core_type<tc>, window_params = [{transform_indices = @transform_0, window_bounds = array<i64: 16, 128>}, {pipeline_mode = #tpu.pipeline_mode<synchronous>, transform_indices = @transform_1, window_bounds = array<i64: 128, 128>}, {pipeline_mode = #tpu.pipeline_mode<synchronous>, transform_indices = @transform_2, window_bounds = array<i64: 128, 128>}, {pipeline_mode = #tpu.pipeline_mode<synchronous>, transform_indices = @transform_3, window_bounds = array<i64: 4, 128>}, {transform_indices = @transform_4, window_bounds = array<i64: 16, 128>}]} {
    %c0 = arith.constant 0 : index
    %c0_0 = arith.constant 0 : index
    %0 = vector.load %arg4[%c0, %c0_0] : memref<4x128xf32, #tpu.memory_space<vmem>>, vector<1x128xf32>
    %c1 = arith.constant 1 : index
    %c0_1 = arith.constant 0 : index
    %1 = vector.load %arg4[%c1, %c0_1] : memref<4x128xf32, #tpu.memory_space<vmem>>, vector<1x128xf32>
    %c2 = arith.constant 2 : index
    %c0_2 = arith.constant 0 : index
    %2 = vector.load %arg4[%c2, %c0_2] : memref<4x128xf32, #tpu.memory_space<vmem>>, vector<1x128xf32>
    %c3 = arith.constant 3 : index
    %c0_3 = arith.constant 0 : index
    %3 = vector.load %arg4[%c3, %c0_3] : memref<4x128xf32, #tpu.memory_space<vmem>>, vector<1x128xf32>
    %c0_4 = arith.constant 0 : index
    %c0_5 = arith.constant 0 : index
    %4 = vector.load %arg1[%c0_4, %c0_5] : memref<16x128xbf16, #tpu.memory_space<vmem>>, vector<16x128xbf16>
    %c0_6 = arith.constant 0 : index
    %c0_7 = arith.constant 0 : index
    %5 = vector.load %arg2[%c0_6, %c0_7] : memref<128x128xbf16, #tpu.memory_space<vmem>>, vector<128x128xbf16>
    %cst = arith.constant dense<0.000000e+00> : vector<16x128xf32>
    %6 = tpu.matmul %4, %5, %cst {dimension_numbers = #tpu.dot_dimension_numbers<[1], [0], [0], [1], [0, 0, 1, 1], [], []>} : vector<16x128xbf16>, vector<128x128xbf16>, vector<16x128xf32> -> vector<16x128xf32>
    %7 = vector.broadcast %0 : vector<1x128xf32> to vector<16x128xf32>
    %8 = arith.addf %6, %7 : vector<16x128xf32>
    %cst_8 = arith.constant 5.000000e-01 : f32
    %9 = vector.broadcast %cst_8 : f32 to vector<16x128xf32>
    %10 = arith.mulf %9, %8 : vector<16x128xf32>
    %cst_9 = arith.constant 0.707106769 : f32
    %11 = vector.broadcast %cst_9 : f32 to vector<16x128xf32>
    %12 = arith.mulf %8, %11 : vector<16x128xf32>
    %13 = math.erf %12 : vector<16x128xf32>
    %cst_10 = arith.constant 1.000000e+00 : f32
    %14 = vector.broadcast %cst_10 : f32 to vector<16x128xf32>
    %15 = arith.addf %14, %13 : vector<16x128xf32>
    %16 = arith.mulf %10, %15 : vector<16x128xf32>
    %17 = arith.truncf %16 : vector<16x128xf32> to vector<16x128xbf16>
    %c0_11 = arith.constant 0 : index
    %c0_12 = arith.constant 0 : index
    %18 = vector.load %arg3[%c0_11, %c0_12] : memref<128x128xbf16, #tpu.memory_space<vmem>>, vector<128x128xbf16>
    %cst_13 = arith.constant dense<0.000000e+00> : vector<16x128xf32>
    %19 = tpu.matmul %17, %18, %cst_13 {dimension_numbers = #tpu.dot_dimension_numbers<[1], [0], [0], [1], [0, 0, 1, 1], [], []>} : vector<16x128xbf16>, vector<128x128xbf16>, vector<16x128xf32> -> vector<16x128xf32>
    %20 = vector.broadcast %1 : vector<1x128xf32> to vector<16x128xf32>
    %21 = arith.addf %19, %20 : vector<16x128xf32>
    %22 = arith.addf %21, %8 : vector<16x128xf32>
    %cst_14 = arith.constant dense<0.000000e+00> : vector<16xf32>
    %23 = vector.multi_reduction <add>, %22, %cst_14 [1] : vector<16x128xf32> to vector<16xf32>
    %24 = vector.shape_cast %23 : vector<16xf32> to vector<16x1xf32>
    %cst_15 = arith.constant 7.812500e-03 : f32
    %25 = vector.broadcast %cst_15 : f32 to vector<16x1xf32>
    %26 = arith.mulf %24, %25 : vector<16x1xf32>
    %27 = vector.broadcast %26 : vector<16x1xf32> to vector<16x128xf32>
    %28 = arith.subf %22, %27 : vector<16x128xf32>
    %29 = arith.mulf %28, %28 : vector<16x128xf32>
    %cst_16 = arith.constant dense<0.000000e+00> : vector<16xf32>
    %30 = vector.multi_reduction <add>, %29, %cst_16 [1] : vector<16x128xf32> to vector<16xf32>
    %31 = vector.shape_cast %30 : vector<16xf32> to vector<16x1xf32>
    %cst_17 = arith.constant 7.812500e-03 : f32
    %32 = vector.broadcast %cst_17 : f32 to vector<16x1xf32>
    %33 = arith.mulf %31, %32 : vector<16x1xf32>
    %cst_18 = arith.constant 9.99999974E-6 : f32
    %34 = vector.broadcast %cst_18 : f32 to vector<16x1xf32>
    %35 = arith.addf %33, %34 : vector<16x1xf32>
    %36 = math.rsqrt %35 : vector<16x1xf32>
    %37 = vector.broadcast %36 : vector<16x1xf32> to vector<16x128xf32>
    %38 = arith.mulf %28, %37 : vector<16x128xf32>
    %39 = vector.broadcast %2 : vector<1x128xf32> to vector<16x128xf32>
    %40 = arith.mulf %38, %39 : vector<16x128xf32>
    %41 = vector.broadcast %3 : vector<1x128xf32> to vector<16x128xf32>
    %42 = arith.addf %40, %41 : vector<16x128xf32>
    %43 = arith.truncf %42 : vector<16x128xf32> to vector<16x128xbf16>
    %c0_19 = arith.constant 0 : index
    %c0_20 = arith.constant 0 : index
    %44 = vector.load %arg5[%c0_19, %c0_20] : memref<16x128xbf16, #tpu.memory_space<vmem>>, vector<16x128xbf16>
    tpu.vector_store %arg5[%c0_19, %c0_20], %43 {strides = array<i32>} : memref<16x128xbf16, #tpu.memory_space<vmem>>, vector<16x128xbf16>,
    return
  }
  func.func @transform_0(%arg0: i32) -> (i32, i32) {
    %c0_i32 = arith.constant 0 : i32
    %c0_i32_0 = arith.constant 0 : i32
    return %arg0, %c0_i32 : i32, i32
  }
  func.func @transform_1(%arg0: i32) -> (i32, i32) {
    %c0_i32 = arith.constant 0 : i32
    %c0_i32_0 = arith.constant 0 : i32
    %c0_i32_1 = arith.constant 0 : i32
    return %c0_i32, %c0_i32_0 : i32, i32
  }
  func.func @transform_2(%arg0: i32) -> (i32, i32) {
    %c0_i32 = arith.constant 0 : i32
    %c0_i32_0 = arith.constant 0 : i32
    %c0_i32_1 = arith.constant 0 : i32
    return %c0_i32, %c0_i32_0 : i32, i32
  }
  func.func @transform_3(%arg0: i32) -> (i32, i32) {
    %c0_i32 = arith.constant 0 : i32
    %c0_i32_0 = arith.constant 0 : i32
    %c0_i32_1 = arith.constant 0 : i32
    return %c0_i32, %c0_i32_0 : i32, i32
  }
  func.func @transform_4(%arg0: i32) -> (i32, i32) {
    %c0_i32 = arith.constant 0 : i32
    %c0_i32_0 = arith.constant 0 : i32
    return %arg0, %c0_i32 : i32, i32
  }
}

</mosaic_0001>

<bundles_post_ra>
// kernel: tpu_custom_call.1
= control target key start
LH: loop header
LB: loop body
LE: loop exit
PB: predicated region body
PF: predicated region fallthrough
CT: control target
= control target key end

     0   :  { %9 = vsyncpa [#allocation3], 0  ;;  %s692_s0 = inlined_call_operand.hbm [shape: bf16[16,128], index: 0, kind: input, shape index: {}]   ;;  %s693_s1 = inlined_call_operand.hbm [shape: bf16[128,128], index: 1, kind: input, shape index: {}]   ;;  %s694_s2 = inlined_call_operand.hbm [shape: bf16[128,128], index: 2, kind: input, shape index: {}]   ;;  %s695_s3 = inlined_call_operand.vmem [shape: f32[4,128], index: 3, kind: input, shape index: {}]   ;;  %s696_s4 = inlined_call_operand.hbm [shape: bf16[16,128], index: 4, kind: output, shape index: {}]  }
   0x1   :  { %10 = vsyncpa [#allocation6], 0 }
   0x2   :  { %11 = vsyncpa [#allocation4], 0  ;;  %s580_s15 = smov [#allocation5]   ;;  %s581_s17 = smov [#allocation2]  }
   0x3   :  { %s29_s16 = sshll.u32 %s580_s15, 4  ;;  %s17_s18 = sshll.u32 %s581_s17, 4  ;;  %s30_s16 = int_to_ptr.vmem [resolvable:$true] %s29_s16  ;;  %s613_s18 = int_to_ptr.vmem [resolvable:$true] %s17_s18 }
   0x4   :  { %s486_s21 = scalar_lea.hbm %s693_s1, 1024 }
   0x5   :  { %p487_p0 = scmp.ne.s32.totalorder %s693_s1, %s486_s21  ;;  %p490_p1 = scmp.lt.u32.totalorder %s486_s21, %s693_s1 }
   0x7   :  { %p492_p2 = pnand %p490_p1, %p487_p0 }
   0x9   :  { %495 = shalt.err (!%p492_p2)
}
   0xa   :  { %s496_s26 = scalar_lea.vmem %s30_s16, 1024  ;;  %p501_p4 = scmp.lt.s32.totalorder %s30_s16, %s30_s16 }
   0xb   :  { %p497_p3 = scmp.ne.s32.totalorder %s30_s16, %s496_s26  ;;  %p502_p5 = scmp.lt.s32.totalorder %s496_s26, %s496_s26 }
   0xd   :  { %p503_p6 = por %p502_p5, %p501_p4 }
   0xf   :  { %p504_p7 = pnand %p503_p6, %p497_p3 }
  0x11   :  { %507 = shalt.err (!%p504_p7)
}
  0x12   :  { %s582_s27 = smov 64   ;;  %s583_s28 = smov 4  }
  0x13   :  { %35 = dma.hbm_to_vmem [thread:$0]  %s693_s1, 1024, %s30_s16, [#allocation6], %s582_s27, %s582_s27, %s583_s28  }
  0x14   :  { %s508_s7 = scalar_lea.hbm %s692_s0, 128 }
  0x15   :  { %p509_p8 = scmp.ne.s32.totalorder %s692_s0, %s508_s7  ;;  %p512_p9 = scmp.lt.u32.totalorder %s508_s7, %s692_s0 }
  0x17   :  { %p514_p10 = pnand %p512_p9, %p509_p8 }
  0x19   :  { %517 = shalt.err (!%p514_p10)
}
  0x1a   :  { %s518_s12 = scalar_lea.vmem %s613_s18, 128  ;;  %p523_p12 = scmp.lt.s32.totalorder %s613_s18, %s613_s18 }
  0x1b   :  { %p519_p11 = scmp.ne.s32.totalorder %s613_s18, %s518_s12  ;;  %p524_p13 = scmp.lt.s32.totalorder %s518_s12, %s518_s12 }
  0x1d   :  { %p525_p0 = por %p524_p13, %p523_p12 }
  0x1f   :  { %p526_p1 = pnand %p525_p0, %p519_p11 }
  0x21   :  { %529 = shalt.err (!%p526_p1)
}
  0x22   :  { %23 = dma.hbm_to_vmem [thread:$0]  %s692_s0, 128, %s613_s18, [#allocation3], %s582_s27, %s582_s27, %s583_s28  }
  0x23   :  { %s584_s14 = smov [#allocation7]   ;;  %s530_s19 = scalar_lea.hbm %s694_s2, 1024 }
  0x24   :  { %s41_s15 = sshll.u32 %s584_s14, 4  ;;  %p531_p2 = scmp.ne.s32.totalorder %s694_s2, %s530_s19  ;;  %s42_s15 = int_to_ptr.vmem [resolvable:$true] %s41_s15 }
  0x25   :  { %p534_p3 = scmp.lt.u32.totalorder %s530_s19, %s694_s2 }
  0x27   :  { %p536_p4 = pnand %p534_p3, %p531_p2 }
  0x29   :  { %539 = shalt.err (!%p536_p4)
}
  0x2a   :  { %s540_s24 = scalar_lea.vmem %s42_s15, 1024  ;;  %p545_p6 = scmp.lt.s32.totalorder %s42_s15, %s42_s15 }
  0x2b   :  { %p541_p5 = scmp.ne.s32.totalorder %s42_s15, %s540_s24  ;;  %p546_p7 = scmp.lt.s32.totalorder %s540_s24, %s540_s24 }
  0x2d   :  { %p547_p8 = por %p546_p7, %p545_p6 }
  0x2f   :  { %p548_p9 = pnand %p547_p8, %p541_p5 }
  0x31   :  { %551 = shalt.err (!%p548_p9)
}
  0x32   :  { %47 = dma.hbm_to_vmem [thread:$0]  %s694_s2, 1024, %s42_s15, [#allocation6], %s582_s27, %s582_s27, %s583_s28  }
  0x33   :  { %574 = dma.done.wait [#allocation3], 128  }
  0x34   :  { %575 = vsyncadd [#allocation3], 4294967168 }
  0x35   :  { %576 = dma.done.wait [#allocation6], 2048  }
  0x36   :  { %577 = vsyncadd [#allocation6], 4294965248  ;;  %v585_v0 = vmov 0.0   ;;  %vm586_vm0 = vmmov 0   ;;  %v461_v1 = vld [vmem:[#allocation5] sm:$0xff]   ;;  %v462_v2 = vld [vmem:[#allocation5 + $0x8] sm:$0xff]  }
  0x37   :  { %413 = vmatprep.subr.bf16.mxu0 %v585_v0  ;;  %429 = vmatprep.mubr.msk.bf16.mxu0 %vm586_vm0, %v585_v0  ;;  %v463_v3 = vld [vmem:[#allocation5 + $0x10] sm:$0xff]   ;;  %v470_v4 = vld [vmem:[#allocation7] sm:$0xff]   ;;  %v464_v5 = vld [vmem:[#allocation5 + $0x18] sm:$0xff]   ;;  %s587_s8 = smov [#allocation8]  }
  0x38   :  { %433 = vmatprep.subr.bf16.mxu1 %v585_v0  ;;  %449 = vmatprep.mubr.msk.bf16.mxu1 %vm586_vm0, %v585_v0  ;;  %v471_v6 = vld [vmem:[#allocation7 + $0x8] sm:$0xff]   ;;  %v465_v7 = vld [vmem:[#allocation5 + $0x20] sm:$0xff]   ;;  %v467_v9 = vld [vmem:[#allocation5 + $0x30] sm:$0xff]   ;;  %s352_s9 = sshll.u32 %s587_s8, 4  ;;  %s353_s9 = int_to_ptr.vmem [resolvable:$true] %s352_s9 }
  0x39   :  { %414 = vmatpush3.bf16.msra.mxu0 %v461_v1  ;;  %434 = vmatpush3.bf16.msra.mxu1 %v470_v4  ;;  %v466_v8 = vld [vmem:[#allocation5 + $0x28] sm:$0xff]   ;;  %v468_v10 = vld [vmem:[#allocation5 + $0x38] sm:$0xff]   ;;  %v472_v12 = vld [vmem:[#allocation7 + $0x10] sm:$0xff]   ;;  %s552_s10 = scalar_lea.vmem %s353_s9, 128  ;;  %p557_p11 = scmp.lt.s32.totalorder %s353_s9, %s353_s9 }
  0x3a   :  { %415 = vmatprep.subr.bf16.mxu0 %v585_v0  ;;  %435 = vmatprep.subr.bf16.mxu1 %v585_v0  ;;  %v469_v11 = vld [vmem:[#allocation2] sm:$0xff]   ;;  %v474_v14 = vld [vmem:[#allocation7 + $0x20] sm:$0xff]   ;;  %v475_v15 = vld [vmem:[#allocation7 + $0x28] sm:$0xff]   ;;  %p553_p10 = scmp.ne.s32.totalorder %s353_s9, %s552_s10  ;;  %p558_p12 = scmp.lt.s32.totalorder %s552_s10, %s552_s10 }
  0x3b   :  { %v473_v13 = vld [vmem:[#allocation7 + $0x18] sm:$0xff]   ;;  %v476_v16 = vld [vmem:[#allocation7 + $0x30] sm:$0xff]  }
  0x3c   :  { %v477_v17 = vld [vmem:[#allocation7 + $0x38] sm:$0xff]   ;;  %p559_p13 = por %p558_p12, %p557_p11 }
  0x3d   :  { %416 = vmatpush3.bf16.msra.mxu0 %v462_v2  ;;  %436 = vmatpush3.bf16.msra.mxu1 %v471_v6  ;;  %v365_v18 = vld [vmem:[%s695_s3] ss:$0 sm:$0xff]  ;;  %v375_v36 = vld [vmem:[%s695_s3 + $0x1] ss:$0 sm:$0xff]  ;;  %v384_v61 = vld [vmem:[%s695_s3 + $0x2] ss:$0 sm:$0xff] }
  0x3e   :  { %417 = vmatprep.subr.bf16.mxu0 %v585_v0  ;;  %437 = vmatprep.subr.bf16.mxu1 %v585_v0  ;;  %v385_v1 = vld [vmem:[%s695_s3 + $0x3] ss:$0 sm:$0xff]  ;;  %p560_p0 = pnand %p559_p13, %p553_p10 }
  0x41   :  { %418 = vmatpush3.bf16.msra.mxu0 %v463_v3  ;;  %438 = vmatpush3.bf16.msra.mxu1 %v472_v12 }
  0x42   :  { %419 = vmatprep.subr.bf16.mxu0 %v585_v0  ;;  %439 = vmatprep.subr.bf16.mxu1 %v585_v0 }
  0x45   :  { %420 = vmatpush3.bf16.msra.mxu0 %v464_v5  ;;  %440 = vmatpush3.bf16.msra.mxu1 %v473_v13 }
  0x46   :  { %421 = vmatprep.subr.bf16.mxu0 %v585_v0  ;;  %441 = vmatprep.subr.bf16.mxu1 %v585_v0 }
  0x49   :  { %422 = vmatpush3.bf16.msra.mxu0 %v465_v7  ;;  %442 = vmatpush3.bf16.msra.mxu1 %v474_v14 }
  0x4a   :  { %423 = vmatprep.subr.bf16.mxu0 %v585_v0  ;;  %443 = vmatprep.subr.bf16.mxu1 %v585_v0 }
  0x4d   :  { %424 = vmatpush3.bf16.msra.mxu0 %v466_v8  ;;  %444 = vmatpush3.bf16.msra.mxu1 %v475_v15 }
  0x4e   :  { %425 = vmatprep.subr.bf16.mxu0 %v585_v0  ;;  %445 = vmatprep.subr.bf16.mxu1 %v585_v0 }
  0x51   :  { %426 = vmatpush3.bf16.msra.mxu0 %v467_v9  ;;  %446 = vmatpush3.bf16.msra.mxu1 %v476_v16 }
  0x52   :  { %427 = vmatprep.subr.bf16.mxu0 %v585_v0  ;;  %447 = vmatprep.subr.bf16.mxu1 %v585_v0 }
  0x55   :  { %428 = vmatpush3.bf16.msra.mxu0 %v468_v10  ;;  %448 = vmatpush3.bf16.msra.mxu1 %v477_v17 }
  0x58   :  { %430 = vmatmul.mubr.bf16.vlgmr.msra.gmra.mrb[0].mxu0 %v469_v11 }
 0x12b   :  { %v174_v19 = vpop.f32.mrb[0].mxu0 }
 0x12c   :  { %v175_v20 = vadd.f32 %v365_v18, %v174_v19  ;;  %v431_v21 = vpop.f32.mrb[1].mxu0 }
 0x12d   :  { %v177_v22 = vpop.f32.mrb[2].mxu0 }
 0x12e   :  { %v183_v23 = vmul.f32 0.70710677, %v175_v20  ;;  %v178_v24 = vadd.f32 %v365_v18, %v177_v22  ;;  %v432_v25 = vpop.f32.mrb[3].mxu0  ;;  %v181_v30 = vmul.f32 0.5, %v175_v20 }
 0x130   :  { %478 = verf.f32 %v183_v23  ;;  %v184_v26 = vmul.f32 0.70710677, %v178_v24  ;;  %v182_v31 = vmul.f32 0.5, %v178_v24 }
 0x132   :  { %480 = verf.f32 %v184_v26 }
 0x13a   :  { %v479_v27 = vpop.eup %478 }
 0x13b   :  { %v187_v28 = vadd.f32 1.0, %v479_v27 }
 0x13c   :  { %v481_v29 = vpop.eup %480 }
 0x13d   :  { %v188_v32 = vadd.f32 1.0, %v481_v29  ;;  %v189_v33 = vmul.f32 %v187_v28, %v181_v30 }
 0x13f   :  { %v190_v34 = vmul.f32 %v188_v32, %v182_v31 }
 0x141   :  { %v191_v35 = vpack.c.bf16 %v190_v34, %v189_v33 }
 0x143   :  { %450 = vmatmul.mubr.bf16.vlgmr.msra.gmra.mrb[0].mxu1 %v191_v35 }
 0x216   :  { %v294_v37 = vpop.f32.mrb[0].mxu1 }
 0x217   :  { %v295_v38 = vadd.f32 %v375_v36, %v294_v37  ;;  %v451_v39 = vpop.f32.mrb[1].mxu1 }
 0x218   :  { %v297_v40 = vpop.f32.mrb[2].mxu1 }
 0x219   :  { %v298_v41 = vadd.f32 %v375_v36, %v297_v40  ;;  %v452_v42 = vpop.f32.mrb[3].mxu1  ;;  %v301_v43 = vadd.f32 %v295_v38, %v175_v20 }
 0x21b   :  { %303 = vadd.xlane.f32.xlu0 %v301_v43  ;;  %v302_v44 = vadd.f32 %v298_v41, %v178_v24 }
 0x21f   :  { %305 = vadd.xlane.f32.xlu0 %v302_v44 }
 0x2a8   :  { %v304_v45 = vpop.xlane.xlu0 %303 }
 0x2a9   :  { %v307_v46 = vmul.f32 0.0078125, %v304_v45 }
 0x2ab   :  { %v309_v47 = vsub.f32 %v301_v43, %v307_v46 }
 0x2ac   :  { %v306_v48 = vpop.xlane.xlu0 %305 }
 0x2ad   :  { %v308_v49 = vmul.f32 0.0078125, %v306_v48  ;;  %v311_v50 = vmul.f32 %v309_v47, %v309_v47 }
 0x2af   :  { %v310_v51 = vsub.f32 %v302_v44, %v308_v49  ;;  %313 = vadd.xlane.f32.xlu1 %v311_v50 }
 0x2b1   :  { %v312_v52 = vmul.f32 %v310_v51, %v310_v51 }
 0x2b3   :  { %315 = vadd.xlane.f32.xlu1 %v312_v52 }
 0x33c   :  { %v314_v53 = vpop.xlane.xlu1 %313 }
 0x33d   :  { %v317_v54 = vmul.f32 0.0078125, %v314_v53 }
 0x33f   :  { %v319_v55 = vadd.f32 1e-05, %v317_v54 }
 0x340   :  { %v316_v56 = vpop.xlane.xlu1 %315 }
 0x341   :  { %482 = vrsqrt.f32 %v319_v55  ;;  %v318_v57 = vmul.f32 0.0078125, %v316_v56 }
 0x343   :  { %v320_v58 = vadd.f32 1e-05, %v318_v57 }
 0x345   :  { %484 = vrsqrt.f32 %v320_v58 }
 0x34b   :  { %v483_v59 = vpop.eup %482 }
 0x34c   :  { %v323_v60 = vmul.f32 %v483_v59, %v309_v47 }
 0x34e   :  { %v329_v0 = vmul.f32 %v384_v61, %v323_v60 }
 0x34f   :  { %v485_v62 = vpop.eup %484 }
 0x350   :  { %v324_v63 = vmul.f32 %v485_v62, %v310_v51  ;;  %v335_v3 = vadd.f32 %v385_v1, %v329_v0 }
 0x352   :  { %v330_v2 = vmul.f32 %v384_v61, %v324_v63 }
 0x354   :  { %v336_v4 = vadd.f32 %v385_v1, %v330_v2 }
 0x356   :  { %v393_v5 = vpack.c.bf16 %v336_v4, %v335_v3 }
 0x358   :  { %394 = vst [vmem:[#allocation8] sm:$0xff] %v393_v5  }
 0x359   :  { %563 = shalt.err (!%p560_p0)
}
 0x35a   :  { %s564_s1 = scalar_lea.hbm %s696_s4, 128 }
 0x35b   :  { %p565_p1 = scmp.ne.s32.totalorder %s696_s4, %s564_s1  ;;  %p568_p2 = scmp.lt.u32.totalorder %s564_s1, %s696_s4 }
 0x35d   :  { %p570_p3 = pnand %p568_p2, %p565_p1 }
 0x35f   :  { %573 = shalt.err (!%p570_p3)
}
 0x360   :  { %358 = dma.vmem_to_hbm [thread:$0]  %s353_s9, 128, %s696_s4, [#allocation4], %s582_s27, %s582_s27, %s583_s28  }
 0x361   :  { %578 = dma.done.wait [#allocation4], 128  }
 0x362   :  { %579 = vsyncadd [#allocation4], 4294967168 }
 0x363   :  { %362 = vsyncpa [#allocation3], 1 }
 0x364   :  { %363 = vsyncpa [#allocation6], 1 }
 0x365   :  { %364 = vsyncpa [#allocation4], 1 }

// kernel: tpu_custom_call.1
= control target key start
LH: loop header
LB: loop body
LE: loop exit
PB: predicated region body
PF: predicated region fallthrough
CT: control target
= control target key end

     0   :  { %9 = vsyncpa [#allocation3], 0  ;;  %s692_s0 = inlined_call_operand.hbm [shape: bf16[16,128], index: 0, kind: input, shape index: {}]   ;;  %s693_s1 = inlined_call_operand.hbm [shape: bf16[128,128], index: 1, kind: input, shape index: {}]   ;;  %s694_s2 = inlined_call_operand.hbm [shape: bf16[128,128], index: 2, kind: input, shape index: {}]   ;;  %s695_s3 = inlined_call_operand.vmem [shape: f32[4,128], index: 3, kind: input, shape index: {}]   ;;  %s696_s4 = inlined_call_operand.hbm [shape: bf16[16,128], index: 4, kind: output, shape index: {}]  }
   0x1   :  { %10 = vsyncpa [#allocation6], 0 }
   0x2   :  { %11 = vsyncpa [#allocation4], 0  ;;  %s580_s15 = smov [#allocation5]   ;;  %s581_s17 = smov [#allocation2]  }
   0x3   :  { %s29_s16 = sshll.u32 %s580_s15, 4  ;;  %s17_s18 = sshll.u32 %s581_s17, 4  ;;  %s30_s16 = int_to_ptr.vmem [resolvable:$true] %s29_s16  ;;  %s613_s18 = int_to_ptr.vmem [resolvable:$true] %s17_s18 }
   0x4   :  { %s486_s21 = scalar_lea.hbm %s693_s1, 1024 }
   0x5   :  { %p487_p0 = scmp.ne.s32.totalorder %s693_s1, %s486_s21  ;;  %p490_p1 = scmp.lt.u32.totalorder %s486_s21, %s693_s1 }
   0x7   :  { %p492_p2 = pnand %p490_p1, %p487_p0 }
   0x9   :  { %495 = shalt.err (!%p492_p2)
}
   0xa   :  { %s496_s26 = scalar_lea.vmem %s30_s16, 1024  ;;  %p501_p4 = scmp.lt.s32.totalorder %s30_s16, %s30_s16 }
   0xb   :  { %p497_p3 = scmp.ne.s32.totalorder %s30_s16, %s496_s26  ;;  %p502_p5 = scmp.lt.s32.totalorder %s496_s26, %s496_s26 }
   0xd   :  { %p503_p6 = por %p502_p5, %p501_p4 }
   0xf   :  { %p504_p7 = pnand %p503_p6, %p497_p3 }
  0x11   :  { %507 = shalt.err (!%p504_p7)
}
  0x12   :  { %s582_s27 = smov 64   ;;  %s583_s28 = smov 4  }
  0x13   :  { %35 = dma.hbm_to_vmem [thread:$0]  %s693_s1, 1024, %s30_s16, [#allocation6], %s582_s27, %s582_s27, %s583_s28  }
  0x14   :  { %s508_s7 = scalar_lea.hbm %s692_s0, 128 }
  0x15   :  { %p509_p8 = scmp.ne.s32.totalorder %s692_s0, %s508_s7  ;;  %p512_p9 = scmp.lt.u32.totalorder %s508_s7, %s692_s0 }
  0x17   :  { %p514_p10 = pnand %p512_p9, %p509_p8 }
  0x19   :  { %517 = shalt.err (!%p514_p10)
}
  0x1a   :  { %s518_s12 = scalar_lea.vmem %s613_s18, 128  ;;  %p523_p12 = scmp.lt.s32.totalorder %s613_s18, %s613_s18 }
  0x1b   :  { %p519_p11 = scmp.ne.s32.totalorder %s613_s18, %s518_s12  ;;  %p524_p13 = scmp.lt.s32.totalorder %s518_s12, %s518_s12 }
  0x1d   :  { %p525_p0 = por %p524_p13, %p523_p12 }
  0x1f   :  { %p526_p1 = pnand %p525_p0, %p519_p11 }
  0x21   :  { %529 = shalt.err (!%p526_p1)
}
  0x22   :  { %23 = dma.hbm_to_vmem [thread:$0]  %s692_s0, 128, %s613_s18, [#allocation3], %s582_s27, %s582_s27, %s583_s28  }
  0x23   :  { %s584_s14 = smov [#allocation7]   ;;  %s530_s19 = scalar_lea.hbm %s694_s2, 1024 }
  0x24   :  { %s41_s15 = sshll.u32 %s584_s14, 4  ;;  %p531_p2 = scmp.ne.s32.totalorder %s694_s2, %s530_s19  ;;  %s42_s15 = int_to_ptr.vmem [resolvable:$true] %s41_s15 }
  0x25   :  { %p534_p3 = scmp.lt.u32.totalorder %s530_s19, %s694_s2 }
  0x27   :  { %p536_p4 = pnand %p534_p3, %p531_p2 }
  0x29   :  { %539 = shalt.err (!%p536_p4)
}
  0x2a   :  { %s540_s24 = scalar_lea.vmem %s42_s15, 1024  ;;  %p545_p6 = scmp.lt.s32.totalorder %s42_s15, %s42_s15 }
  0x2b   :  { %p541_p5 = scmp.ne.s32.totalorder %s42_s15, %s540_s24  ;;  %p546_p7 = scmp.lt.s32.totalorder %s540_s24, %s540_s24 }
  0x2d   :  { %p547_p8 = por %p546_p7, %p545_p6 }
  0x2f   :  { %p548_p9 = pnand %p547_p8, %p541_p5 }
  0x31   :  { %551 = shalt.err (!%p548_p9)
}
  0x32   :  { %47 = dma.hbm_to_vmem [thread:$0]  %s694_s2, 1024, %s42_s15, [#allocation6], %s582_s27, %s582_s27, %s583_s28  }
  0x33   :  { %574 = dma.done.wait [#allocation3], 128  }
  0x34   :  { %575 = vsyncadd [#allocation3], 4294967168 }
  0x35   :  { %576 = dma.done.wait [#allocation6], 2048  }
  0x36   :  { %577 = vsyncadd [#allocation6], 4294965248  ;;  %v585_v0 = vmov 0.0   ;;  %vm586_vm0 = vmmov 0   ;;  %v461_v1 = vld [vmem:[#allocation5] sm:$0xff]   ;;  %v462_v2 = vld [vmem:[#allocation5 + $0x8] sm:$0xff]  }
  0x37   :  { %413 = vmatprep.subr.bf16.mxu0 %v585_v0  ;;  %429 = vmatprep.mubr.msk.bf16.mxu0 %vm586_vm0, %v585_v0  ;;  %v463_v3 = vld [vmem:[#allocation5 + $0x10] sm:$0xff]   ;;  %v470_v4 = vld [vmem:[#allocation7] sm:$0xff]   ;;  %v464_v5 = vld [vmem:[#allocation5 + $0x18] sm:$0xff]   ;;  %s587_s8 = smov [#allocation8]  }
  0x38   :  { %433 = vmatprep.subr.bf16.mxu1 %v585_v0  ;;  %449 = vmatprep.mubr.msk.bf16.mxu1 %vm586_vm0, %v585_v0  ;;  %v471_v6 = vld [vmem:[#allocation7 + $0x8] sm:$0xff]   ;;  %v465_v7 = vld [vmem:[#allocation5 + $0x20] sm:$0xff]   ;;  %v467_v9 = vld [vmem:[#allocation5 + $0x30] sm:$0xff]   ;;  %s352_s9 = sshll.u32 %s587_s8, 4  ;;  %s353_s9 = int_to_ptr.vmem [resolvable:$true] %s352_s9 }
  0x39   :  { %414 = vmatpush3.bf16.msra.mxu0 %v461_v1  ;;  %434 = vmatpush3.bf16.msra.mxu1 %v470_v4  ;;  %v466_v8 = vld [vmem:[#allocation5 + $0x28] sm:$0xff]   ;;  %v468_v10 = vld [vmem:[#allocation5 + $0x38] sm:$0xff]   ;;  %v472_v12 = vld [vmem:[#allocation7 + $0x10] sm:$0xff]   ;;  %s552_s10 = scalar_lea.vmem %s353_s9, 128  ;;  %p557_p11 = scmp.lt.s32.totalorder %s353_s9, %s353_s9 }
  0x3a   :  { %415 = vmatprep.subr.bf16.mxu0 %v585_v0  ;;  %435 = vmatprep.subr.bf16.mxu1 %v585_v0  ;;  %v469_v11 = vld [vmem:[#allocation2] sm:$0xff]   ;;  %v474_v14 = vld [vmem:[#allocation7 + $0x20] sm:$0xff]   ;;  %v475_v15 = vld [vmem:[#allocation7 + $0x28] sm:$0xff]   ;;  %p553_p10 = scmp.ne.s32.totalorder %s353_s9, %s552_s10  ;;  %p558_p12 = scmp.lt.s32.totalorder %s552_s10, %s552_s10 }
  0x3b   :  { %v473_v13 = vld [vmem:[#allocation7 + $0x18] sm:$0xff]   ;;  %v476_v16 = vld [vmem:[#allocation7 + $0x30] sm:$0xff]  }
  0x3c   :  { %v477_v17 = vld [vmem:[#allocation7 + $0x38] sm:$0xff]   ;;  %p559_p13 = por %p558_p12, %p557_p11 }
  0x3d   :  { %416 = vmatpush3.bf16.msra.mxu0 %v462_v2  ;;  %436 = vmatpush3.bf16.msra.mxu1 %v471_v6  ;;  %v365_v18 = vld [vmem:[%s695_s3] ss:$0 sm:$0xff]  ;;  %v375_v36 = vld [vmem:[%s695_s3 + $0x1] ss:$0 sm:$0xff]  ;;  %v384_v61 = vld [vmem:[%s695_s3 + $0x2] ss:$0 sm:$0xff] }
  0x3e   :  { %417 = vmatprep.subr.bf16.mxu0 %v585_v0  ;;  %437 = vmatprep.subr.bf16.mxu1 %v585_v0  ;;  %v385_v1 = vld [vmem:[%s695_s3 + $0x3] ss:$0 sm:$0xff]  ;;  %p560_p0 = pnand %p559_p13, %p553_p10 }
  0x41   :  { %418 = vmatpush3.bf16.msra.mxu0 %v463_v3  ;;  %438 = vmatpush3.bf16.msra.mxu1 %v472_v12 }
  0x42   :  { %419 = vmatprep.subr.bf16.mxu0 %v585_v0  ;;  %439 = vmatprep.subr.bf16.mxu1 %v585_v0 }
  0x45   :  { %420 = vmatpush3.bf16.msra.mxu0 %v464_v5  ;;  %440 = vmatpush3.bf16.msra.mxu1 %v473_v13 }
  0x46   :  { %421 = vmatprep.subr.bf16.mxu0 %v585_v0  ;;  %441 = vmatprep.subr.bf16.mxu1 %v585_v0 }
  0x49   :  { %422 = vmatpush3.bf16.msra.mxu0 %v465_v7  ;;  %442 = vmatpush3.bf16.msra.mxu1 %v474_v14 }
  0x4a   :  { %423 = vmatprep.subr.bf16.mxu0 %v585_v0  ;;  %443 = vmatprep.subr.bf16.mxu1 %v585_v0 }
  0x4d   :  { %424 = vmatpush3.bf16.msra.mxu0 %v466_v8  ;;  %444 = vmatpush3.bf16.msra.mxu1 %v475_v15 }
  0x4e   :  { %425 = vmatprep.subr.bf16.mxu0 %v585_v0  ;;  %445 = vmatprep.subr.bf16.mxu1 %v585_v0 }
  0x51   :  { %426 = vmatpush3.bf16.msra.mxu0 %v467_v9  ;;  %446 = vmatpush3.bf16.msra.mxu1 %v476_v16 }
  0x52   :  { %427 = vmatprep.subr.bf16.mxu0 %v585_v0  ;;  %447 = vmatprep.subr.bf16.mxu1 %v585_v0 }
  0x55   :  { %428 = vmatpush3.bf16.msra.mxu0 %v468_v10  ;;  %448 = vmatpush3.bf16.msra.mxu1 %v477_v17 }
  0x58   :  { %430 = vmatmul.mubr.bf16.vlgmr.msra.gmra.mrb[0].mxu0 %v469_v11 }
 0x12b   :  { %v174_v19 = vpop.f32.mrb[0].mxu0 }
 0x12c   :  { %v175_v20 = vadd.f32 %v365_v18, %v174_v19  ;;  %v431_v21 = vpop.f32.mrb[1].mxu0 }
 0x12d   :  { %v177_v22 = vpop.f32.mrb[2].mxu0 }
 0x12e   :  { %v183_v23 = vmul.f32 0.70710677, %v175_v20  ;;  %v178_v24 = vadd.f32 %v365_v18, %v177_v22  ;;  %v432_v25 = vpop.f32.mrb[3].mxu0  ;;  %v181_v30 = vmul.f32 0.5, %v175_v20 }
 0x130   :  { %478 = verf.f32 %v183_v23  ;;  %v184_v26 = vmul.f32 0.70710677, %v178_v24  ;;  %v182_v31 = vmul.f32 0.5, %v178_v24 }
 0x132   :  { %480 = verf.f32 %v184_v26 }
 0x13a   :  { %v479_v27 = vpop.eup %478 }
 0x13b   :  { %v187_v28 = vadd.f32 1.0, %v479_v27 }
 0x13c   :  { %v481_v29 = vpop.eup %480 }
 0x13d   :  { %v188_v32 = vadd.f32 1.0, %v481_v29  ;;  %v189_v33 = vmul.f32 %v187_v28, %v181_v30 }
 0x13f   :  { %v190_v34 = vmul.f32 %v188_v32, %v182_v31 }
 0x141   :  { %v191_v35 = vpack.c.bf16 %v190_v34, %v189_v33 }
 0x143   :  { %450 = vmatmul.mubr.bf16.vlgmr.msra.gmra.mrb[0].mxu1 %v191_v35 }
 0x216   :  { %v294_v37 = vpop.f32.mrb[0].mxu1 }
 0x217   :  { %v295_v38 = vadd.f32 %v375_v36, %v294_v37  ;;  %v451_v39 = vpop.f32.mrb[1].mxu1 }
 0x218   :  { %v297_v40 = vpop.f32.mrb[2].mxu1 }
 0x219   :  { %v298_v41 = vadd.f32 %v375_v36, %v297_v40  ;;  %v452_v42 = vpop.f32.mrb[3].mxu1  ;;  %v301_v43 = vadd.f32 %v295_v38, %v175_v20 }
 0x21b   :  { %303 = vadd.xlane.f32.xlu0 %v301_v43  ;;  %v302_v44 = vadd.f32 %v298_v41, %v178_v24 }
 0x21f   :  { %305 = vadd.xlane.f32.xlu0 %v302_v44 }
 0x2a8   :  { %v304_v45 = vpop.xlane.xlu0 %303 }
 0x2a9   :  { %v307_v46 = vmul.f32 0.0078125, %v304_v45 }
 0x2ab   :  { %v309_v47 = vsub.f32 %v301_v43, %v307_v46 }
 0x2ac   :  { %v306_v48 = vpop.xlane.xlu0 %305 }
 0x2ad   :  { %v308_v49 = vmul.f32 0.0078125, %v306_v48  ;;  %v311_v50 = vmul.f32 %v309_v47, %v309_v47 }
 0x2af   :  { %v310_v51 = vsub.f32 %v302_v44, %v308_v49  ;;  %313 = vadd.xlane.f32.xlu1 %v311_v50 }
 0x2b1   :  { %v312_v52 = vmul.f32 %v310_v51, %v310_v51 }
 0x2b3   :  { %315 = vadd.xlane.f32.xlu1 %v312_v52 }
 0x33c   :  { %v314_v53 = vpop.xlane.xlu1 %313 }
 0x33d   :  { %v317_v54 = vmul.f32 0.0078125, %v314_v53 }
 0x33f   :  { %v319_v55 = vadd.f32 1e-05, %v317_v54 }
 0x340   :  { %v316_v56 = vpop.xlane.xlu1 %315 }
 0x341   :  { %482 = vrsqrt.f32 %v319_v55  ;;  %v318_v57 = vmul.f32 0.0078125, %v316_v56 }
 0x343   :  { %v320_v58 = vadd.f32 1e-05, %v318_v57 }
 0x345   :  { %484 = vrsqrt.f32 %v320_v58 }
 0x34b   :  { %v483_v59 = vpop.eup %482 }
 0x34c   :  { %v323_v60 = vmul.f32 %v483_v59, %v309_v47 }
 0x34e   :  { %v329_v0 = vmul.f32 %v384_v61, %v323_v60 }
 0x34f   :  { %v485_v62 = vpop.eup %484 }
 0x350   :  { %v324_v63 = vmul.f32 %v485_v62, %v310_v51  ;;  %v335_v3 = vadd.f32 %v385_v1, %v329_v0 }
 0x352   :  { %v330_v2 = vmul.f32 %v384_v61, %v324_v63 }
 0x354   :  { %v336_v4 = vadd.f32 %v385_v1, %v330_v2 }
 0x356   :  { %v393_v5 = vpack.c.bf16 %v336_v4, %v335_v3 }
 0x358   :  { %394 = vst [vmem:[#allocation8] sm:$0xff] %v393_v5  }
 0x359   :  { %563 = shalt.err (!%p560_p0)
}
 0x35a   :  { %s564_s1 = scalar_lea.hbm %s696_s4, 128 }
 0x35b   :  { %p565_p1 = scmp.ne.s32.totalorder %s696_s4, %s564_s1  ;;  %p568_p2 = scmp.lt.u32.totalorder %s564_s1, %s696_s4 }
 0x35d   :  { %p570_p3 = pnand %p568_p2, %p565_p1 }
 0x35f   :  { %573 = shalt.err (!%p570_p3)
}
 0x360   :  { %358 = dma.vmem_to_hbm [thread:$0]  %s353_s9, 128, %s696_s4, [#allocation4], %s582_s27, %s582_s27, %s583_s28  }
 0x361   :  { %578 = dma.done.wait [#allocation4], 128  }
 0x362   :  { %579 = vsyncadd [#allocation4], 4294967168 }
 0x363   :  { %362 = vsyncpa [#allocation3], 1 }
 0x364   :  { %363 = vsyncpa [#allocation6], 1 }
 0x365   :  { %364 = vsyncpa [#allocation4], 1 }

</bundles_post_ra>
